<compile_context>
chip_gen: v7x
topology: tpu7x:2x2x1
jax: 0.10.0
libtpu: 0.0.40
codegen_flags: <defaults>
</compile_context>

<pallas_src>
import jax
import jax.numpy as jnp
from jax.experimental import pallas as pl
from jax.experimental.pallas import tpu as pltpu


def _round_up(x, m):
    return ((x + m - 1) // m) * m


def _pick_batch_tile(B):
    b128 = _round_up(max(B, 1), 128)
    tb = min(2048, b128)
    # v7x has 2 TensorCores sharing the "parallel" batch axis: once the batch is
    # big enough, cap TB so there are >= 2 tiles (no-op on single-TC v5e/v6e).
    if b128 >= 256:
        tb = min(tb, _round_up((b128 + 1) // 2, 128))
    return tb


def _mlp_tail(u, m, w1u_ref, w1m_ref, b1_ref, w2_ref, b2_ref, w3_ref, b3_ref, o_ref):
    """Shared MLP body. u, m: (TB, E). Writes a lane-dense (1, TB) output row."""
    cdt = w1u_ref.dtype  # bf16 MXU operand dtype; accumulation stays f32.

    # fc1 without materializing the concat: [u | m] @ w1 == u @ w1[:E] + m @ w1[E:]
    h1 = (jnp.dot(u.astype(cdt), w1u_ref[...], preferred_element_type=jnp.float32)
          + jnp.dot(m.astype(cdt), w1m_ref[...], preferred_element_type=jnp.float32)
          + b1_ref[...])
    h1 = jnp.maximum(h1, 0.0)                                              # (TB, 64)

    h2 = jnp.dot(h1.astype(cdt), w2_ref[...],
                 preferred_element_type=jnp.float32) + b2_ref[...]
    h2 = jnp.maximum(h2, 0.0)                                              # (TB, 32)

    # fc3 (N=1) as an M=1 matmul contracting the 32-dim of both operands:
    # (1, 32) x (TB, 32) -> (1, TB). The result is already lane-dense, so the
    # output block gets unmasked stores and no transpose/relayout is needed.
    out = jax.lax.dot_general(
        w3_ref[...], h2.astype(cdt),
        dimension_numbers=(((1,), (1,)), ((), ())),
        preferred_element_type=jnp.float32) + b3_ref[...]                  # (1, TB)
    o_ref[...] = out.astype(o_ref.dtype)


def _fused_gather_mlp_kernel(uid_ref, mid_ref, utbl_ref, mtbl_ref,
                             w1u_ref, w1m_ref, b1_ref, w2_ref, b2_ref,
                             w3_ref, b3_ref, o_ref):
    tb = uid_ref.shape[0]
    nu = utbl_ref.shape[0]
    nm = mtbl_ref.shape[0]

    uid = uid_ref[...]                                   # (TB, 1) int32
    mid = mid_ref[...]                                   # (TB, 1) int32

    # In-kernel embedding gather as one-hot MXU matmuls against VMEM-resident
    # tables. Exact (single 1.0 per row), no dynamic-gather OOB hazard, and the
    # per-row HBM traffic is just 8 B of ids instead of a (B, E) f32 stream.
    u_oh = (uid == jax.lax.broadcasted_iota(jnp.int32, (tb, nu), 1)).astype(utbl_ref.dtype)
    m_oh = (mid == jax.lax.broadcasted_iota(jnp.int32, (tb, nm), 1)).astype(mtbl_ref.dtype)
    u = jnp.dot(u_oh, utbl_ref[...], preferred_element_type=jnp.float32)   # (TB, E)
    m = jnp.dot(m_oh, mtbl_ref[...], preferred_element_type=jnp.float32)   # (TB, E)

    _mlp_tail(u, m, w1u_ref, w1m_ref, b1_ref, w2_ref, b2_ref, w3_ref, b3_ref, o_ref)


def _streams_mlp_kernel(u_ref, m_ref, w1u_ref, w1m_ref, b1_ref, w2_ref, b2_ref,
                        w3_ref, b3_ref, o_ref):
    _mlp_tail(u_ref[...], m_ref[...], w1u_ref, w1m_ref, b1_ref, w2_ref, b2_ref,
              w3_ref, b3_ref, o_ref)


def _const_spec(arr):
    # Full-array block, constant index_map -> VMEM-resident across grid steps.
    return pl.BlockSpec(arr.shape, lambda i: (0, 0))


def explicit_feedback_forward(params, user_ids, movie_ids):
    """Forward pass of ExplicitFeedbackModel. Gather + MLP fused in Pallas."""
    NU, E = params["user_emb"].shape
    NM = params["movie_emb"].shape[0]
    B = int(user_ids.shape[0])

    TB = _pick_batch_tile(B)
    B_pad = _round_up(B, TB)
    num_tiles = B_pad // TB
    pad = B_pad - B

    cdt = jnp.bfloat16  # MXU-operand dtype; accumulation is f32 in-kernel.

    w1 = params["w1"]
    w1u = w1[:E].astype(cdt)                     # (E, 64)
    w1m = w1[E:].astype(cdt)                     # (E, 64)
    b1 = params["b1"].reshape(1, -1).astype(jnp.float32)
    w2 = params["w2"].astype(cdt)                # (64, 32)
    b2 = params["b2"].reshape(1, -1).astype(jnp.float32)
    w3 = params["w3"].reshape(1, -1).astype(cdt)  # (1, 32) row for the M=1 fc3
    b3 = params["b3"].reshape(1, 1).astype(jnp.float32)

    out_shape = jax.ShapeDtypeStruct((1, B_pad), jnp.float32)   # lane-dense output
    out_spec = pl.BlockSpec((1, TB), lambda i: (0, i))
    cparams = pltpu.CompilerParams(dimension_semantics=("parallel",))

    # Fuse the gather only when both tables are comfortably VMEM-resident and
    # the one-hot K dims stay small (keeps per-tile footprint well under the
    # 32 MiB scoped / 64 MiB physical VMEM on v7x).
    fuse = max(NU, NM) <= 1024

    if fuse:
        NU_pad = _round_up(NU, 128)
        NM_pad = _round_up(NM, 128)
        utbl = jnp.zeros((NU_pad, E), cdt).at[:NU].set(params["user_emb"].astype(cdt))
        mtbl = jnp.zeros((NM_pad, E), cdt).at[:NM].set(params["movie_emb"].astype(cdt))

        # Clamp ids (nn.Embedding would error on OOB; padded zero-rows are never hit).
        uid = jnp.clip(user_ids.astype(jnp.int32), 0, NU - 1)
        mid = jnp.clip(movie_ids.astype(jnp.int32), 0, NM - 1)
        uid = jnp.pad(uid, (0, pad)).reshape(B_pad, 1)
        mid = jnp.pad(mid, (0, pad)).reshape(B_pad, 1)

        out = pl.pallas_call(
            _fused_gather_mlp_kernel,
            out_shape=out_shape,
            grid_spec=pltpu.PrefetchScalarGridSpec(
                num_scalar_prefetch=0,
                grid=(num_tiles,),
                in_specs=[
                    pl.BlockSpec((TB, 1), lambda i: (i, 0)),   # user ids
                    pl.BlockSpec((TB, 1), lambda i: (i, 0)),   # movie ids
                    _const_spec(utbl), _const_spec(mtbl),      # tables: VMEM-resident
                    _const_spec(w1u), _const_spec(w1m), _const_spec(b1),
                    _const_spec(w2), _const_spec(b2),
                    _const_spec(w3), _const_spec(b3),
                ],
                out_specs=out_spec,
            ),
            compiler_params=cparams,
        )(uid, mid, utbl, mtbl, w1u, w1m, b1, w2, b2, w3, b3)
    else:
        # Fallback for huge tables: gather in XLA glue, stream bf16 embeddings.
        uid = jnp.pad(user_ids, (0, pad))
        mid = jnp.pad(movie_ids, (0, pad))
        u = jnp.take(params["user_emb"], uid, axis=0).astype(cdt)   # (B_pad, E)
        m = jnp.take(params["movie_emb"], mid, axis=0).astype(cdt)  # (B_pad, E)

        out = pl.pallas_call(
            _streams_mlp_kernel,
            out_shape=out_shape,
            grid_spec=pltpu.PrefetchScalarGridSpec(
                num_scalar_prefetch=0,
                grid=(num_tiles,),
                in_specs=[
                    pl.BlockSpec((TB, E), lambda i: (i, 0)),   # user-embed stream
                    pl.BlockSpec((TB, E), lambda i: (i, 0)),   # movie-embed stream
                    _const_spec(w1u), _const_spec(w1m), _const_spec(b1),
                    _const_spec(w2), _const_spec(b2),
                    _const_spec(w3), _const_spec(b3),
                ],
                out_specs=out_spec,
            ),
            compiler_params=cparams,
        )(u, m, w1u, w1m, b1, w2, b2, w3, b3)

    # matches torch .squeeze(): (B, 1) -> (B,) (and () for B == 1)
    return jnp.squeeze(out.reshape(-1)[:B])


def init_params(key, num_users, num_movies, embedding_dim=32):
    ks = jax.random.split(key, 8)

    def lin_init(k, fan_in, shape):
        bound = 1.0 / jnp.sqrt(fan_in)
        return jax.random.uniform(k, shape, jnp.float32, -bound, bound)

    return {
        "user_emb": jax.random.normal(ks[0], (num_users, embedding_dim), jnp.float32),
        "movie_emb": jax.random.normal(ks[1], (num_movies, embedding_dim), jnp.float32),
        "w1": lin_init(ks[2], 2 * embedding_dim, (2 * embedding_dim, 64)),
        "b1": lin_init(ks[3], 2 * embedding_dim, (1, 64)),
        "w2": lin_init(ks[4], 64, (64, 32)),
        "b2": lin_init(ks[5], 64, (1, 32)),
        "w3": lin_init(ks[6], 32, (32, 1)),
        "b3": lin_init(ks[7], 32, (1, 1)),
    }


if __name__ == "__main__":
    key = jax.random.PRNGKey(0)
    num_users, num_movies, embedding_dim = 100, 200, 32
    batch = 8

    pkey, ukey, mkey = jax.random.split(key, 3)
    params = init_params(pkey, num_users, num_movies, embedding_dim)
    user_ids = jax.random.randint(ukey, (batch,), 0, num_users, dtype=jnp.int32)
    movie_ids = jax.random.randint(mkey, (batch,), 0, num_movies, dtype=jnp.int32)

    out = jax.jit(explicit_feedback_forward)(params, user_ids, movie_ids)
    out = jax.block_until_ready(out)

    # Reference in plain JAX at HIGHEST precision. The kernel uses bf16 MXU
    # operands with f32 accumulation, so the tolerance is loosened accordingly.
    hp = jax.lax.Precision.HIGHEST
    ue = jnp.take(params["user_emb"], user_ids, axis=0)
    me = jnp.take(params["movie_emb"], movie_ids, axis=0)
    c = jnp.concatenate([ue, me], axis=1)
    h1 = jnp.maximum(jnp.dot(c, params["w1"], precision=hp) + params["b1"], 0.0)
    h2 = jnp.maximum(jnp.dot(h1, params["w2"], precision=hp) + params["b2"], 0.0)
    ref = jnp.squeeze(jnp.dot(h2, params["w3"], precision=hp) + params["b3"], axis=-1)

    assert out.shape == (batch,), out.shape
    assert jnp.allclose(out, ref, atol=5e-2, rtol=5e-2), jnp.max(jnp.abs(out - ref))
    print("KERNEL_OK")
</pallas_src>

<mosaic_0001>
module attributes {stable_mosaic.version = 11 : i64} {
  func.func @_fused_gather_mlp_kernel(%arg0: i32, %arg1: memref<128x1xi32, #tpu.memory_space<vmem>>, %arg2: memref<128x1xi32, #tpu.memory_space<vmem>>, %arg3: memref<128x32xbf16, #tpu.memory_space<vmem>>, %arg4: memref<256x32xbf16, #tpu.memory_space<vmem>>, %arg5: memref<32x64xbf16, #tpu.memory_space<vmem>>, %arg6: memref<32x64xbf16, #tpu.memory_space<vmem>>, %arg7: memref<1x64xf32, #tpu.memory_space<vmem>>, %arg8: memref<64x32xbf16, #tpu.memory_space<vmem>>, %arg9: memref<1x32xf32, #tpu.memory_space<vmem>>, %arg10: memref<1x32xbf16, #tpu.memory_space<vmem>>, %arg11: memref<1x1xf32, #tpu.memory_space<vmem>>, %arg12: memref<1x128xf32, #tpu.memory_space<vmem>>) attributes {dimension_semantics = [#tpu.dimension_semantics<parallel>], iteration_bounds = array<i64: 1>, scalar_prefetch = 0 : i64, scratch_operands = 0 : i64, tpu.core_type = #tpu.core_type<tc>, window_params = [{transform_indices = @transform_0, window_bounds = array<i64: 128, 1>}, {transform_indices = @transform_1, window_bounds = array<i64: 128, 1>}, {pipeline_mode = #tpu.pipeline_mode<synchronous>, transform_indices = @transform_2, window_bounds = array<i64: 128, 32>}, {pipeline_mode = #tpu.pipeline_mode<synchronous>, transform_indices = @transform_3, window_bounds = array<i64: 256, 32>}, {pipeline_mode = #tpu.pipeline_mode<synchronous>, transform_indices = @transform_4, window_bounds = array<i64: 32, 64>}, {pipeline_mode = #tpu.pipeline_mode<synchronous>, transform_indices = @transform_5, window_bounds = array<i64: 32, 64>}, {pipeline_mode = #tpu.pipeline_mode<synchronous>, transform_indices = @transform_6, window_bounds = array<i64: 1, 64>}, {pipeline_mode = #tpu.pipeline_mode<synchronous>, transform_indices = @transform_7, window_bounds = array<i64: 64, 32>}, {pipeline_mode = #tpu.pipeline_mode<synchronous>, transform_indices = @transform_8, window_bounds = array<i64: 1, 32>}, {pipeline_mode = #tpu.pipeline_mode<synchronous>, transform_indices = @transform_9, window_bounds = array<i64: 1, 32>}, {pipeline_mode = #tpu.pipeline_mode<synchronous>, transform_indices = @transform_10, window_bounds = array<i64: 1, 1>}, {transform_indices = @transform_11, window_bounds = array<i64: 1, 128>}]} {
    %c0 = arith.constant 0 : index
    %c0_0 = arith.constant 0 : index
    %0 = vector.load %arg1[%c0, %c0_0] : memref<128x1xi32, #tpu.memory_space<vmem>>, vector<128x1xi32>
    %c0_1 = arith.constant 0 : index
    %c0_2 = arith.constant 0 : index
    %1 = vector.load %arg2[%c0_1, %c0_2] : memref<128x1xi32, #tpu.memory_space<vmem>>, vector<128x1xi32>
    %2 = tpu.iota {dimensions = array<i32: 1>} : vector<128x128xi32>
    %3 = vector.broadcast %0 : vector<128x1xi32> to vector<128x128xi32>
    %4 = arith.cmpi eq, %3, %2 : vector<128x128xi32>
    %5 = arith.extui %4 : vector<128x128xi1> to vector<128x128xi32>
    %6 = arith.sitofp %5 : vector<128x128xi32> to vector<128x128xf32>
    %7 = arith.truncf %6 : vector<128x128xf32> to vector<128x128xbf16>
    %8 = tpu.iota {dimensions = array<i32: 1>} : vector<128x256xi32>
    %9 = vector.broadcast %1 : vector<128x1xi32> to vector<128x256xi32>
    %10 = arith.cmpi eq, %9, %8 : vector<128x256xi32>
    %11 = arith.extui %10 : vector<128x256xi1> to vector<128x256xi32>
    %12 = arith.sitofp %11 : vector<128x256xi32> to vector<128x256xf32>
    %13 = arith.truncf %12 : vector<128x256xf32> to vector<128x256xbf16>
    %c0_3 = arith.constant 0 : index
    %c0_4 = arith.constant 0 : index
    %14 = vector.load %arg3[%c0_3, %c0_4] : memref<128x32xbf16, #tpu.memory_space<vmem>>, vector<128x32xbf16>
    %cst = arith.constant dense<0.000000e+00> : vector<128x32xf32>
    %15 = tpu.matmul %7, %14, %cst {dimension_numbers = #tpu.dot_dimension_numbers<[1], [0], [0], [1], [0, 0, 1, 1], [], []>} : vector<128x128xbf16>, vector<128x32xbf16>, vector<128x32xf32> -> vector<128x32xf32>
    %c0_5 = arith.constant 0 : index
    %c0_6 = arith.constant 0 : index
    %16 = vector.load %arg4[%c0_5, %c0_6] : memref<256x32xbf16, #tpu.memory_space<vmem>>, vector<256x32xbf16>
    %cst_7 = arith.constant dense<0.000000e+00> : vector<128x32xf32>
    %17 = tpu.matmul %13, %16, %cst_7 {dimension_numbers = #tpu.dot_dimension_numbers<[1], [0], [0], [1], [0, 0, 1, 1], [], []>} : vector<128x256xbf16>, vector<256x32xbf16>, vector<128x32xf32> -> vector<128x32xf32>
    %18 = arith.truncf %15 : vector<128x32xf32> to vector<128x32xbf16>
    %c0_8 = arith.constant 0 : index
    %c0_9 = arith.constant 0 : index
    %19 = vector.load %arg5[%c0_8, %c0_9] : memref<32x64xbf16, #tpu.memory_space<vmem>>, vector<32x64xbf16>
    %cst_10 = arith.constant dense<0.000000e+00> : vector<128x64xf32>
    %20 = tpu.matmul %18, %19, %cst_10 {dimension_numbers = #tpu.dot_dimension_numbers<[1], [0], [0], [1], [0, 0, 1, 1], [], []>} : vector<128x32xbf16>, vector<32x64xbf16>, vector<128x64xf32> -> vector<128x64xf32>
    %21 = arith.truncf %17 : vector<128x32xf32> to vector<128x32xbf16>
    %c0_11 = arith.constant 0 : index
    %c0_12 = arith.constant 0 : index
    %22 = vector.load %arg6[%c0_11, %c0_12] : memref<32x64xbf16, #tpu.memory_space<vmem>>, vector<32x64xbf16>
    %cst_13 = arith.constant dense<0.000000e+00> : vector<128x64xf32>
    %23 = tpu.matmul %21, %22, %cst_13 {dimension_numbers = #tpu.dot_dimension_numbers<[1], [0], [0], [1], [0, 0, 1, 1], [], []>} : vector<128x32xbf16>, vector<32x64xbf16>, vector<128x64xf32> -> vector<128x64xf32>
    %24 = arith.addf %20, %23 : vector<128x64xf32>
    %c0_14 = arith.constant 0 : index
    %c0_15 = arith.constant 0 : index
    %25 = vector.load %arg7[%c0_14, %c0_15] : memref<1x64xf32, #tpu.memory_space<vmem>>, vector<1x64xf32>
    %26 = vector.broadcast %25 : vector<1x64xf32> to vector<128x64xf32>
    %27 = arith.addf %24, %26 : vector<128x64xf32>
    %cst_16 = arith.constant 0.000000e+00 : f32
    %28 = vector.broadcast %cst_16 : f32 to vector<128x64xf32>
    %29 = arith.maximumf %27, %28 : vector<128x64xf32>
    %30 = arith.truncf %29 : vector<128x64xf32> to vector<128x64xbf16>
    %c0_17 = arith.constant 0 : index
    %c0_18 = arith.constant 0 : index
    %31 = vector.load %arg8[%c0_17, %c0_18] : memref<64x32xbf16, #tpu.memory_space<vmem>>, vector<64x32xbf16>
    %cst_19 = arith.constant dense<0.000000e+00> : vector<128x32xf32>
    %32 = tpu.matmul %30, %31, %cst_19 {dimension_numbers = #tpu.dot_dimension_numbers<[1], [0], [0], [1], [0, 0, 1, 1], [], []>} : vector<128x64xbf16>, vector<64x32xbf16>, vector<128x32xf32> -> vector<128x32xf32>
    %c0_20 = arith.constant 0 : index
    %c0_21 = arith.constant 0 : index
    %33 = vector.load %arg9[%c0_20, %c0_21] : memref<1x32xf32, #tpu.memory_space<vmem>>, vector<1x32xf32>
    %34 = vector.broadcast %33 : vector<1x32xf32> to vector<128x32xf32>
    %35 = arith.addf %32, %34 : vector<128x32xf32>
    %cst_22 = arith.constant 0.000000e+00 : f32
    %36 = vector.broadcast %cst_22 : f32 to vector<128x32xf32>
    %37 = arith.maximumf %35, %36 : vector<128x32xf32>
    %c0_23 = arith.constant 0 : index
    %c0_24 = arith.constant 0 : index
    %38 = vector.load %arg10[%c0_23, %c0_24] : memref<1x32xbf16, #tpu.memory_space<vmem>>, vector<1x32xbf16>
    %39 = arith.truncf %37 : vector<128x32xf32> to vector<128x32xbf16>
    %cst_25 = arith.constant dense<0.000000e+00> : vector<1x128xf32>
    %40 = tpu.matmul %38, %39, %cst_25 {dimension_numbers = #tpu.dot_dimension_numbers<[1], [1], [0], [0], [0, 0, 1, 0], [], []>} : vector<1x32xbf16>, vector<128x32xbf16>, vector<1x128xf32> -> vector<1x128xf32>
    %c0_26 = arith.constant 0 : index
    %c0_27 = arith.constant 0 : index
    %41 = vector.load %arg11[%c0_26, %c0_27] : memref<1x1xf32, #tpu.memory_space<vmem>>, vector<1x1xf32>
    %42 = vector.broadcast %41 : vector<1x1xf32> to vector<1x128xf32>
    %43 = arith.addf %40, %42 : vector<1x128xf32>
    %c0_28 = arith.constant 0 : index
    %c0_29 = arith.constant 0 : index
    %44 = vector.load %arg12[%c0_28, %c0_29] : memref<1x128xf32, #tpu.memory_space<vmem>>, vector<1x128xf32>
    tpu.vector_store %arg12[%c0_28, %c0_29], %43 {strides = array<i32>} : memref<1x128xf32, #tpu.memory_space<vmem>>, vector<1x128xf32>,
    return
  }
  func.func @transform_0(%arg0: i32) -> (i32, i32) {
    %c0_i32 = arith.constant 0 : i32
    %c0_i32_0 = arith.constant 0 : i32
    return %arg0, %c0_i32 : i32, i32
  }
  func.func @transform_1(%arg0: i32) -> (i32, i32) {
    %c0_i32 = arith.constant 0 : i32
    %c0_i32_0 = arith.constant 0 : i32
    return %arg0, %c0_i32 : i32, i32
  }
  func.func @transform_2(%arg0: i32) -> (i32, i32) {
    %c0_i32 = arith.constant 0 : i32
    %c0_i32_0 = arith.constant 0 : i32
    %c0_i32_1 = arith.constant 0 : i32
    return %c0_i32, %c0_i32_0 : i32, i32
  }
  func.func @transform_3(%arg0: i32) -> (i32, i32) {
    %c0_i32 = arith.constant 0 : i32
    %c0_i32_0 = arith.constant 0 : i32
    %c0_i32_1 = arith.constant 0 : i32
    return %c0_i32, %c0_i32_0 : i32, i32
  }
  func.func @transform_4(%arg0: i32) -> (i32, i32) {
    %c0_i32 = arith.constant 0 : i32
    %c0_i32_0 = arith.constant 0 : i32
    %c0_i32_1 = arith.constant 0 : i32
    return %c0_i32, %c0_i32_0 : i32, i32
  }
  func.func @transform_5(%arg0: i32) -> (i32, i32) {
    %c0_i32 = arith.constant 0 : i32
    %c0_i32_0 = arith.constant 0 : i32
    %c0_i32_1 = arith.constant 0 : i32
    return %c0_i32, %c0_i32_0 : i32, i32
  }
  func.func @transform_6(%arg0: i32) -> (i32, i32) {
    %c0_i32 = arith.constant 0 : i32
    %c0_i32_0 = arith.constant 0 : i32
    %c0_i32_1 = arith.constant 0 : i32
    return %c0_i32, %c0_i32_0 : i32, i32
  }
  func.func @transform_7(%arg0: i32) -> (i32, i32) {
    %c0_i32 = arith.constant 0 : i32
    %c0_i32_0 = arith.constant 0 : i32
    %c0_i32_1 = arith.constant 0 : i32
    return %c0_i32, %c0_i32_0 : i32, i32
  }
  func.func @transform_8(%arg0: i32) -> (i32, i32) {
    %c0_i32 = arith.constant 0 : i32
    %c0_i32_0 = arith.constant 0 : i32
    %c0_i32_1 = arith.constant 0 : i32
    return %c0_i32, %c0_i32_0 : i32, i32
  }
  func.func @transform_9(%arg0: i32) -> (i32, i32) {
    %c0_i32 = arith.constant 0 : i32
    %c0_i32_0 = arith.constant 0 : i32
    %c0_i32_1 = arith.constant 0 : i32
    return %c0_i32, %c0_i32_0 : i32, i32
  }
  func.func @transform_10(%arg0: i32) -> (i32, i32) {
    %c0_i32 = arith.constant 0 : i32
    %c0_i32_0 = arith.constant 0 : i32
    %c0_i32_1 = arith.constant 0 : i32
    return %c0_i32, %c0_i32_0 : i32, i32
  }
  func.func @transform_11(%arg0: i32) -> (i32, i32) {
    %c0_i32 = arith.constant 0 : i32
    %c0_i32_0 = arith.constant 0 : i32
    return %c0_i32, %arg0 : i32, i32
  }
}

</mosaic_0001>

<bundles_post_ra>
// kernel: explicit_feedback_forward.1
= control target key start
LH: loop header
LB: loop body
LE: loop exit
PB: predicated region body
PF: predicated region fallthrough
CT: control target
= control target key end

     0   :  { %v1782_v0 = vmov 0   ;;  %v73_v60 = vlaneseq  ;;  %s2192_s1 = inlined_call_operand.vmem [shape: s32[128,1], index: 1, kind: input, shape index: {}]   ;;  %s2193_s10 = inlined_call_operand.<no memory space> [shape: f32[1,1], index: 10, kind: input, shape index: {}]   ;;  %s2194_s0 = inlined_call_operand.vmem [shape: s32[128,1], index: 0, kind: input, shape index: {}]   ;;  %s2195_s3 = inlined_call_operand.vmem [shape: bf16[256,32], index: 3, kind: input, shape index: {}]   ;;  %s2196_s2 = inlined_call_operand.vmem [shape: bf16[128,32], index: 2, kind: input, shape index: {}]   ;;  %s2197_s5 = inlined_call_operand.vmem [shape: bf16[32,64], index: 5, kind: input, shape index: {}]   ;;  %s2198_s4 = inlined_call_operand.vmem [shape: bf16[32,64], index: 4, kind: input, shape index: {}]   ;;  %s2199_s7 = inlined_call_operand.vmem [shape: bf16[64,32], index: 7, kind: input, shape index: {}]   ;;  %s2200_s6 = inlined_call_operand.vmem [shape: f32[1,64], index: 6, kind: input, shape index: {}]   ;;  %s2201_s8 = inlined_call_operand.vmem [shape: f32[1,32], index: 8, kind: input, shape index: {}]   ;;  %s2202_s9 = inlined_call_operand.vmem [shape: bf16[1,32], index: 9, kind: input, shape index: {}]   ;;  %s2203_s11 = inlined_call_operand.vmem [shape: f32[1,128], index: 11, kind: output, shape index: {}]  }
   0x1   :  { %1749 = vset.pattern.permute.xlu1 %v1782_v0  ;;  %1748 = vset.pattern.permute.xlu0 %v1782_v0  ;;  %v59_v1 = vld [vmem:[%s2192_s1 + $0x10] sm:$0xff]  ;;  %v57_v2 = vld [vmem:[%s2192_s1] sm:$0xff]  ;;  %v16_v3 = vstv %s2193_s10  ;;  %v60_v4 = vld [vmem:[%s2192_s1 + $0x18] sm:$0xff] }
   0x2   :  { %187 = vperm.xlu1 %1749, %v59_v1   ;;  %181 = vperm.xlu0 %1748, %v57_v2   ;;  %17 = vst [vmem:[#allocation2] sm:$0x1] %v16_v3  ;;  %v58_v5 = vld [vmem:[%s2192_s1 + $0x8] sm:$0xff]  ;;  %v41_v7 = vld [vmem:[%s2194_s0] sm:$0xff]  ;;  %v44_v8 = vld [vmem:[%s2194_s0 + $0x18] sm:$0xff]  ;;  %v2021_v61 = vand.u32 127, %v73_v60 }
   0x3   :  { %v42_v6 = vld [vmem:[%s2194_s0 + $0x8] sm:$0xff]  ;;  %v43_v9 = vld [vmem:[%s2194_s0 + $0x10] sm:$0xff]  ;;  %v1750_v10 = vld [vmem:[%s2195_s3 + $0x40] sm:$0xff]  }
   0x4   :  { %v62_v11 = vld [vmem:[%s2192_s1 + $0x28] sm:$0xff]  ;;  %v61_v12 = vld [vmem:[%s2192_s1 + $0x20] sm:$0xff]  ;;  %1503 = vmatprep.subr.bf16.mxu1 %v1750_v10  ;;  %v64_v17 = vld [vmem:[%s2192_s1 + $0x38] sm:$0xff]  ;;  %v2024_v0 = vadd.s32 128, %v2021_v61 }
   0x5   :  { %v1751_v13 = vld [vmem:[%s2195_s3] sm:$0xff]   ;;  %v1752_v14 = vld [vmem:[%s2195_s3 + $0x48] sm:$0xff]   ;;  %v1755_v18 = vld [vmem:[%s2195_s3 + $0x50] sm:$0xff]  }
   0x6   :  { %190 = vperm.xlu1 %1749, %v60_v4   ;;  %184 = vperm.xlu0 %1748, %v58_v5   ;;  %v1753_v15 = vld [vmem:[%s2195_s3 + $0x8] sm:$0xff]   ;;  %v1754_v16 = vld [vmem:[%s2196_s2] sm:$0xff]   ;;  %v63_v19 = vld [vmem:[%s2192_s1 + $0x30] sm:$0xff]  ;;  %v1783_v5 = vmov 1.0|1.0  }
   0x7   :  { %1504 = vmatpush3.bf16.msra.mxu1 %v1751_v13  ;;  %1608 = vmatprep.subr.bf16.mxu0 %v1754_v16  ;;  %v1757_v20 = vld [vmem:[%s2196_s2 + $0x8] sm:$0xff]   ;;  %v1756_v21 = vld [vmem:[%s2195_s3 + $0x10] sm:$0xff]   ;;  %v45_v23 = vld [vmem:[%s2194_s0 + $0x20] sm:$0xff] }
   0x8   :  { %1505 = vmatprep.subr.bf16.mxu1 %v1752_v14  ;;  %1609 = vmatpush3.bf16.msra.mxu0 %v1754_v16  ;;  %v46_v22 = vld [vmem:[%s2194_s0 + $0x28] sm:$0xff]  ;;  %v1758_v24 = vld [vmem:[%s2195_s3 + $0x58] sm:$0xff]   ;;  %v1760_v25 = vld [vmem:[%s2196_s2 + $0x10] sm:$0xff]  }
   0x9   :  { %1610 = vmatprep.subr.bf16.mxu0 %v1757_v20  ;;  %v1759_v26 = vld [vmem:[%s2195_s3 + $0x18] sm:$0xff]   ;;  %v1761_v27 = vld [vmem:[%s2195_s3 + $0x60] sm:$0xff]   ;;  %v47_v30 = vld [vmem:[%s2194_s0 + $0x30] sm:$0xff] }
   0xa   :  { %79 = vperm.xlu1 %1749, %v42_v6   ;;  %76 = vperm.xlu0 %1748, %v41_v7   ;;  %v48_v28 = vld [vmem:[%s2194_s0 + $0x38] sm:$0xff]  ;;  %v1762_v31 = vld [vmem:[%s2195_s3 + $0x20] sm:$0xff]   ;;  %v1764_v32 = vld [vmem:[%s2195_s3 + $0x68] sm:$0xff]  }
   0xb   :  { %1506 = vmatpush3.bf16.msra.mxu1 %v1753_v15  ;;  %v1763_v29 = vld [vmem:[%s2196_s2 + $0x18] sm:$0xff]   ;;  %v66_v33 = vld [vmem:[%s2192_s1 + $0x48] sm:$0xff]  ;;  %v1766_v34 = vld [vmem:[%s2196_s2 + $0x20] sm:$0xff]  }
   0xc   :  { %1507 = vmatprep.subr.bf16.mxu1 %v1755_v18  ;;  %1611 = vmatpush3.bf16.msra.mxu0 %v1757_v20  ;;  %v65_v35 = vld [vmem:[%s2192_s1 + $0x40] sm:$0xff]  ;;  %v1765_v36 = vld [vmem:[%s2195_s3 + $0x28] sm:$0xff]   ;;  %v1767_v37 = vld [vmem:[%s2195_s3 + $0x70] sm:$0xff]  }
   0xd   :  { %1612 = vmatprep.subr.bf16.mxu0 %v1760_v25  ;;  %v1769_v38 = vld [vmem:[%s2196_s2 + $0x28] sm:$0xff]   ;;  %v68_v39 = vld [vmem:[%s2192_s1 + $0x58] sm:$0xff]  ;;  %v67_v40 = vld [vmem:[%s2192_s1 + $0x50] sm:$0xff] }
   0xe   :  { %85 = vperm.xlu1 %1749, %v44_v8   ;;  %82 = vperm.xlu0 %1748, %v43_v9   ;;  %v1768_v41 = vld [vmem:[%s2195_s3 + $0x30] sm:$0xff]   ;;  %v1770_v42 = vld [vmem:[%s2195_s3 + $0x78] sm:$0xff]   ;;  %v50_v44 = vld [vmem:[%s2194_s0 + $0x48] sm:$0xff] }
   0xf   :  { %1508 = vmatpush3.bf16.msra.mxu1 %v1756_v21  ;;  %v1772_v43 = vld [vmem:[%s2196_s2 + $0x30] sm:$0xff]   ;;  %v49_v45 = vld [vmem:[%s2194_s0 + $0x40] sm:$0xff]  ;;  %v1771_v46 = vld [vmem:[%s2195_s3 + $0x38] sm:$0xff]  }
  0x10   :  { %1509 = vmatprep.subr.bf16.mxu1 %v1758_v24  ;;  %1613 = vmatpush3.bf16.msra.mxu0 %v1760_v25  ;;  %v1773_v47 = vld [vmem:[%s2196_s2 + $0x38] sm:$0xff]   ;;  %v51_v49 = vld [vmem:[%s2194_s0 + $0x50] sm:$0xff]  ;;  %v70_v50 = vld [vmem:[%s2192_s1 + $0x68] sm:$0xff] }
  0x11   :  { %1614 = vmatprep.subr.bf16.mxu0 %v1763_v29  ;;  %v52_v48 = vld [vmem:[%s2194_s0 + $0x58] sm:$0xff]  ;;  %v69_v51 = vld [vmem:[%s2192_s1 + $0x60] sm:$0xff]  ;;  %v71_v53 = vld [vmem:[%s2192_s1 + $0x70] sm:$0xff] }
  0x12   :  { %196 = vperm.xlu1 %1749, %v62_v11   ;;  %193 = vperm.xlu0 %1748, %v61_v12   ;;  %v72_v52 = vld [vmem:[%s2192_s1 + $0x78] sm:$0xff]  ;;  %v54_v54 = vld [vmem:[%s2194_s0 + $0x68] sm:$0xff]  ;;  %v53_v55 = vld [vmem:[%s2194_s0 + $0x60] sm:$0xff] }
  0x13   :  { %1510 = vmatpush3.bf16.msra.mxu1 %v1759_v26  ;;  %v56_v56 = vld [vmem:[%s2194_s0 + $0x78] sm:$0xff]  ;;  %v55_v57 = vld [vmem:[%s2194_s0 + $0x70] sm:$0xff]  ;;  %v1250_v58 = vld [vmem:[#allocation2] sm:$0x1] }
  0x14   :  { %1511 = vmatprep.subr.bf16.mxu1 %v1761_v27  ;;  %1615 = vmatpush3.bf16.msra.mxu0 %v1763_v29  ;;  %v1774_v59 = vld [vmem:[%s2197_s5] sm:$0xff]   ;;  %v1775_v6 = vld [vmem:[%s2197_s5 + $0x8] sm:$0xff]  }
  0x15   :  { %1616 = vmatprep.subr.bf16.mxu0 %v1766_v34 }
  0x16   :  { %202 = vperm.xlu1 %1749, %v64_v17   ;;  %199 = vperm.xlu0 %1748, %v63_v19  }
  0x17   :  { %1512 = vmatpush3.bf16.msra.mxu1 %v1762_v31 }
  0x18   :  { %1513 = vmatprep.subr.bf16.mxu1 %v1764_v32  ;;  %1617 = vmatpush3.bf16.msra.mxu0 %v1766_v34  ;;  %v1778_v34 = vld [vmem:[%s2199_s7] sm:$0xff]  }
  0x19   :  { %1618 = vmatprep.subr.bf16.mxu0 %v1769_v38 }
  0x1a   :  { %91 = vperm.xlu1 %1749, %v46_v22   ;;  %88 = vperm.xlu0 %1748, %v45_v23  }
  0x1b   :  { %1514 = vmatpush3.bf16.msra.mxu1 %v1765_v36 }
  0x1c   :  { %1515 = vmatprep.subr.bf16.mxu1 %v1767_v37  ;;  %1619 = vmatpush3.bf16.msra.mxu0 %v1769_v38 }
  0x1d   :  { %1620 = vmatprep.subr.bf16.mxu0 %v1772_v43 }
  0x1e   :  { %97 = vperm.xlu1 %1749, %v48_v28   ;;  %94 = vperm.xlu0 %1748, %v47_v30  }
  0x1f   :  { %1516 = vmatpush3.bf16.msra.mxu1 %v1768_v41 }
  0x20   :  { %1517 = vmatprep.subr.bf16.mxu1 %v1770_v42  ;;  %1621 = vmatpush3.bf16.msra.mxu0 %v1772_v43 }
  0x21   :  { %1622 = vmatprep.subr.bf16.mxu0 %v1773_v47 }
  0x22   :  { %208 = vperm.xlu1 %1749, %v66_v33   ;;  %205 = vperm.xlu0 %1748, %v65_v35   ;;  %v1776_v33 = vld [vmem:[%s2198_s4] sm:$0xff]  }
  0x23   :  { %1518 = vmatpush3.bf16.msra.mxu1 %v1771_v46 }
  0x24   :  { %1623 = vmatpush3.bf16.msra.mxu0 %v1773_v47  ;;  %1724 = vmatprep.subr.bf16.mxu1 %v1774_v59 }
  0x25   :  { %1640 = vmatprep.subr.bf16.mxu0 %v1774_v59 }
  0x26   :  { %214 = vperm.xlu1 %1749, %v68_v39   ;;  %211 = vperm.xlu0 %1748, %v67_v40  }
  0x2a   :  { %103 = vperm.xlu1 %1749, %v50_v44   ;;  %100 = vperm.xlu0 %1748, %v49_v45  }
  0x2e   :  { %109 = vperm.xlu1 %1749, %v52_v48   ;;  %106 = vperm.xlu0 %1748, %v51_v49  }
  0x32   :  { %220 = vperm.xlu1 %1749, %v70_v50   ;;  %217 = vperm.xlu0 %1748, %v69_v51  }
  0x36   :  { %226 = vperm.xlu1 %1749, %v72_v52   ;;  %223 = vperm.xlu0 %1748, %v71_v53  }
  0x3a   :  { %115 = vperm.xlu1 %1749, %v54_v54   ;;  %112 = vperm.xlu0 %1748, %v53_v55   ;;  %v1777_v55 = vld [vmem:[%s2198_s4 + $0x8] sm:$0xff]  }
  0x3e   :  { %121 = vperm.xlu1 %1749, %v56_v56   ;;  %118 = vperm.xlu0 %1748, %v55_v57  }
  0x42   :  { %1253 = vperm.xlu0 %1748, %v1250_v58  }
  0x81   :  { %v188_v62 = vpop.permute.xlu1 %187  ;;  %v182_v63 = vpop.permute.xlu0 %181 }
  0x82   :  { %vm233_vm0 = vcmp.eq.s32.totalorder %v188_v62, %v2024_v0  ;;  %vm228_vm4 = vcmp.eq.s32.totalorder %v182_v63, %v2021_v61  ;;  %vm229_vm7 = vcmp.eq.s32.totalorder %v182_v63, %v2024_v0  ;;  %vm232_vm14 = vcmp.eq.s32.totalorder %v188_v62, %v2021_v61 }
  0x85   :  { %v191_v1 = vpop.permute.xlu1 %190  ;;  %v185_v2 = vpop.permute.xlu0 %184 }
  0x86   :  { %vm235_vm1 = vcmp.eq.s32.totalorder %v191_v1, %v2024_v0  ;;  %vm230_vm2 = vcmp.eq.s32.totalorder %v185_v2, %v2021_v61  ;;  %vm231_vm3 = vcmp.eq.s32.totalorder %v185_v2, %v2024_v0  ;;  %vm234_vm15 = vcmp.eq.s32.totalorder %v191_v1, %v2021_v61 }
  0x87   :  { %vm1424_vm5 = vmpackc.low %vm235_vm1, %vm233_vm0 }
  0x88   :  { %vm1422_vm6 = vmpackc.low %vm230_vm2, %vm228_vm4 }
  0x89   :  { %v80_v3 = vpop.permute.xlu1 %79  ;;  %v77_v4 = vpop.permute.xlu0 %76  ;;  %vm1420_vm8 = vmpackc.low %vm231_vm3, %vm229_vm7 }
  0x8a   :  { %vm124_vm9 = vcmp.eq.s32.totalorder %v80_v3, %v2021_v61  ;;  %vm123_vm10 = vcmp.eq.s32.totalorder %v77_v4, %v2021_v61  ;;  %1421 = vmatprep.mubr.msk.bf16.mxu1 %vm1420_vm8, %v1783_v5  ;;  %vm1426_vm1 = vmpackc.low %vm234_vm15, %vm232_vm14 }
  0x8b   :  { %vm1388_vm11 = vmpackc.low %vm124_vm9, %vm123_vm10  ;;  %1423 = vmatmul.mubr.msk.bf16.vlgmr.msra.gmra.mrb[0].mxu1 %vm1422_vm6, %v1783_v5 }
  0x8c   :  { %1624 = vmatprep.mubr.msk.bf16.mxu0 %vm1388_vm11, %v1783_v5  ;;  %1425 = vmatprep.mubr.msk.bf16.mxu1 %vm1424_vm5, %v1783_v5 }
  0x8d   :  { %v86_v7 = vpop.permute.xlu1 %85  ;;  %v83_v8 = vpop.permute.xlu0 %82  ;;  %1726 = vmatpush3.bf16.msra.mxu1 %v1774_v59 }
  0x8e   :  { %vm126_vm12 = vcmp.eq.s32.totalorder %v86_v7, %v2021_v61  ;;  %vm125_vm13 = vcmp.eq.s32.totalorder %v83_v8, %v2021_v61  ;;  %1725 = vmatprep.subr.bf16.mxu1 %v1775_v6 }
  0x8f   :  { %vm1390_vm0 = vmpackc.low %vm126_vm12, %vm125_vm13 }
  0x90   :  { %1625 = vmatmul.mubr.msk.bf16.vlgmr.msra.gmra.mrb[0].mxu0 %vm1390_vm0, %v1783_v5 }
  0x91   :  { %v197_v9 = vpop.permute.xlu1 %196  ;;  %v194_v10 = vpop.permute.xlu0 %193  ;;  %1641 = vmatpush3.bf16.msra.mxu0 %v1774_v59  ;;  %1727 = vmatpush3.bf16.msra.mxu1 %v1775_v6 }
  0x92   :  { %vm239_vm2 = vcmp.eq.s32.totalorder %v197_v9, %v2024_v0  ;;  %vm237_vm3 = vcmp.eq.s32.totalorder %v194_v10, %v2024_v0  ;;  %1642 = vmatprep.subr.bf16.mxu0 %v1775_v6  ;;  %vm238_vm5 = vcmp.eq.s32.totalorder %v197_v9, %v2021_v61  ;;  %vm236_vm6 = vcmp.eq.s32.totalorder %v194_v10, %v2021_v61 }
  0x93   :  { %vm1428_vm4 = vmpackc.low %vm239_vm2, %vm237_vm3  ;;  %1427 = vmatmul.mubr.msk.bf16.gmra.mrb[4].mxu1 %vm1426_vm1, %v1783_v5  ;;  %1680 = vmatprep.subr.bf16.mxu1 %v1778_v34 }
  0x94   :  { %1429 = vmatprep.mubr.msk.bf16.mxu1 %vm1428_vm4, %v1783_v5  ;;  %vm1430_vm9 = vmpackc.low %vm238_vm5, %vm236_vm6 }
  0x95   :  { %v203_v11 = vpop.permute.xlu1 %202  ;;  %v200_v12 = vpop.permute.xlu0 %199  ;;  %1643 = vmatpush3.bf16.msra.mxu0 %v1775_v6 }
  0x96   :  { %vm243_vm7 = vcmp.eq.s32.totalorder %v203_v11, %v2024_v0  ;;  %vm241_vm8 = vcmp.eq.s32.totalorder %v200_v12, %v2024_v0  ;;  %vm242_vm0 = vcmp.eq.s32.totalorder %v203_v11, %v2021_v61  ;;  %vm240_vm1 = vcmp.eq.s32.totalorder %v200_v12, %v2021_v61  ;;  %1660 = vmatprep.subr.bf16.mxu0 %v1776_v33 }
  0x97   :  { %vm1432_vm13 = vmpackc.low %vm243_vm7, %vm241_vm8 }
  0x98   :  { %vm1434_vm3 = vmpackc.low %vm242_vm0, %vm240_vm1 }
  0x99   :  { %v92_v13 = vpop.permute.xlu1 %91  ;;  %v89_v14 = vpop.permute.xlu0 %88 }
  0x9a   :  { %vm128_vm10 = vcmp.eq.s32.totalorder %v92_v13, %v2021_v61  ;;  %vm127_vm11 = vcmp.eq.s32.totalorder %v89_v14, %v2021_v61  ;;  %v1779_v13 = vld [vmem:[%s2199_s7 + $0x8] sm:$0xff]  }
  0x9b   :  { %vm1392_vm12 = vmpackc.low %vm128_vm10, %vm127_vm11  ;;  %1431 = vmatmul.mubr.msk.bf16.gmra.mrb[8].mxu1 %vm1430_vm9, %v1783_v5 }
  0x9c   :  { %1628 = vmatprep.mubr.msk.bf16.mxu0 %vm1392_vm12, %v1783_v5  ;;  %1433 = vmatprep.mubr.msk.bf16.mxu1 %vm1432_vm13, %v1783_v5 }
  0x9d   :  { %v98_v15 = vpop.permute.xlu1 %97  ;;  %v95_v16 = vpop.permute.xlu0 %94 }
  0x9e   :  { %vm130_vm14 = vcmp.eq.s32.totalorder %v98_v15, %v2021_v61  ;;  %vm129_vm15 = vcmp.eq.s32.totalorder %v95_v16, %v2021_v61 }
  0x9f   :  { %vm1394_vm2 = vmpackc.low %vm130_vm14, %vm129_vm15 }
  0xa0   :  { %1629 = vmatmul.mubr.msk.bf16.gmra.mrb[4].mxu0 %vm1394_vm2, %v1783_v5 }
  0xa1   :  { %v209_v17 = vpop.permute.xlu1 %208  ;;  %v206_v18 = vpop.permute.xlu0 %205 }
  0xa2   :  { %vm247_vm4 = vcmp.eq.s32.totalorder %v209_v17, %v2024_v0  ;;  %vm245_vm5 = vcmp.eq.s32.totalorder %v206_v18, %v2024_v0  ;;  %vm246_vm7 = vcmp.eq.s32.totalorder %v209_v17, %v2021_v61  ;;  %vm244_vm8 = vcmp.eq.s32.totalorder %v206_v18, %v2021_v61  ;;  %v1780_v18 = vld [vmem:[%s2199_s7 + $0x10] sm:$0xff]  }
  0xa3   :  { %vm1436_vm6 = vmpackc.low %vm247_vm4, %vm245_vm5  ;;  %1435 = vmatmul.mubr.msk.bf16.gmra.mrb[12].mxu1 %vm1434_vm3, %v1783_v5 }
  0xa4   :  { %1437 = vmatprep.mubr.msk.bf16.mxu1 %vm1436_vm6, %v1783_v5  ;;  %vm1438_vm11 = vmpackc.low %vm246_vm7, %vm244_vm8 }
  0xa5   :  { %v215_v19 = vpop.permute.xlu1 %214  ;;  %v212_v20 = vpop.permute.xlu0 %211 }
  0xa6   :  { %vm251_vm9 = vcmp.eq.s32.totalorder %v215_v19, %v2024_v0  ;;  %vm249_vm10 = vcmp.eq.s32.totalorder %v212_v20, %v2024_v0  ;;  %vm250_vm2 = vcmp.eq.s32.totalorder %v215_v19, %v2021_v61  ;;  %vm248_vm3 = vcmp.eq.s32.totalorder %v212_v20, %v2021_v61 }
  0xa7   :  { %vm1440_vm15 = vmpackc.low %vm251_vm9, %vm249_vm10 }
  0xa8   :  { %vm1442_vm5 = vmpackc.low %vm250_vm2, %vm248_vm3 }
  0xa9   :  { %v104_v21 = vpop.permute.xlu1 %103  ;;  %v101_v22 = vpop.permute.xlu0 %100 }
  0xaa   :  { %vm132_vm12 = vcmp.eq.s32.totalorder %v104_v21, %v2021_v61  ;;  %vm131_vm13 = vcmp.eq.s32.totalorder %v101_v22, %v2021_v61 }
  0xab   :  { %vm1396_vm14 = vmpackc.low %vm132_vm12, %vm131_vm13  ;;  %1439 = vmatmul.mubr.msk.bf16.gmra.mrb[16].mxu1 %vm1438_vm11, %v1783_v5 }
  0xac   :  { %1632 = vmatprep.mubr.msk.bf16.mxu0 %vm1396_vm14, %v1783_v5  ;;  %1441 = vmatprep.mubr.msk.bf16.mxu1 %vm1440_vm15, %v1783_v5 }
  0xad   :  { %v110_v23 = vpop.permute.xlu1 %109  ;;  %v107_v24 = vpop.permute.xlu0 %106 }
  0xae   :  { %vm134_vm0 = vcmp.eq.s32.totalorder %v110_v23, %v2021_v61  ;;  %vm133_vm1 = vcmp.eq.s32.totalorder %v107_v24, %v2021_v61 }
  0xaf   :  { %vm1398_vm4 = vmpackc.low %vm134_vm0, %vm133_vm1 }
  0xb0   :  { %1633 = vmatmul.mubr.msk.bf16.gmra.mrb[8].mxu0 %vm1398_vm4, %v1783_v5 }
  0xb1   :  { %v221_v25 = vpop.permute.xlu1 %220  ;;  %v218_v26 = vpop.permute.xlu0 %217 }
  0xb2   :  { %vm255_vm6 = vcmp.eq.s32.totalorder %v221_v25, %v2024_v0  ;;  %vm253_vm7 = vcmp.eq.s32.totalorder %v218_v26, %v2024_v0  ;;  %vm254_vm9 = vcmp.eq.s32.totalorder %v221_v25, %v2021_v61  ;;  %vm252_vm10 = vcmp.eq.s32.totalorder %v218_v26, %v2021_v61 }
  0xb3   :  { %vm1444_vm8 = vmpackc.low %vm255_vm6, %vm253_vm7  ;;  %1443 = vmatmul.mubr.msk.bf16.gmra.mrb[20].mxu1 %vm1442_vm5, %v1783_v5 }
  0xb4   :  { %1445 = vmatprep.mubr.msk.bf16.mxu1 %vm1444_vm8, %v1783_v5  ;;  %vm1446_vm13 = vmpackc.low %vm254_vm9, %vm252_vm10  ;;  %vm762_vm8 = vcmask 261120   ;;  %vm1103_vm9 = vcmask 523264   ;;  %vm1785_vm10 = vmmov 0  }
  0xb5   :  { %v227_v27 = vpop.permute.xlu1 %226  ;;  %v224_v28 = vpop.permute.xlu0 %223 }
  0xb6   :  { %vm259_vm11 = vcmp.eq.s32.totalorder %v227_v27, %v2024_v0  ;;  %vm257_vm12 = vcmp.eq.s32.totalorder %v224_v28, %v2024_v0  ;;  %vm258_vm5 = vcmp.eq.s32.totalorder %v227_v27, %v2021_v61  ;;  %vm256_vm6 = vcmp.eq.s32.totalorder %v224_v28, %v2021_v61 }
  0xb7   :  { %vm1448_vm1 = vmpackc.low %vm259_vm11, %vm257_vm12 }
  0xb8   :  { %vm1450_vm7 = vmpackc.low %vm258_vm5, %vm256_vm6 }
  0xb9   :  { %v116_v29 = vpop.permute.xlu1 %115  ;;  %v113_v30 = vpop.permute.xlu0 %112 }
  0xba   :  { %vm136_vm14 = vcmp.eq.s32.totalorder %v116_v29, %v2021_v61  ;;  %vm135_vm15 = vcmp.eq.s32.totalorder %v113_v30, %v2021_v61 }
  0xbb   :  { %vm1400_vm0 = vmpackc.low %vm136_vm14, %vm135_vm15  ;;  %1447 = vmatmul.mubr.msk.bf16.gmra.mrb[24].mxu1 %vm1446_vm13, %v1783_v5 }
  0xbc   :  { %1636 = vmatprep.mubr.msk.bf16.mxu0 %vm1400_vm0, %v1783_v5  ;;  %1449 = vmatprep.mubr.msk.bf16.mxu1 %vm1448_vm1, %v1783_v5 }
  0xbd   :  { %v122_v31 = vpop.permute.xlu1 %121  ;;  %v119_v32 = vpop.permute.xlu0 %118 }
  0xbe   :  { %vm138_vm2 = vcmp.eq.s32.totalorder %v122_v31, %v2021_v61  ;;  %vm137_vm3 = vcmp.eq.s32.totalorder %v119_v32, %v2021_v61 }
  0xbf   :  { %vm1402_vm4 = vmpackc.low %vm138_vm2, %vm137_vm3 }
  0xc0   :  { %1637 = vmatmul.mubr.msk.bf16.gmra.mrb[12].mxu0 %vm1402_vm4, %v1783_v5 }
  0xc3   :  { %1451 = vmatmul.mubr.msk.bf16.gmra.mrb[28].mxu1 %vm1450_vm7, %v1783_v5 }
 0x15e   :  { %v1519_v35 = vpop.f32.mrb[0].mxu1 }
 0x15f   :  { %v1520_v36 = vpop.f32.mrb[1].mxu1 }
 0x160   :  { %v1521_v37 = vadd.f32 %v1520_v36, %v1519_v35  ;;  %v1522_v38 = vpop.f32.mrb[2].mxu1 }
 0x161   :  { %v1523_v39 = vpop.f32.mrb[3].mxu1 }
 0x162   :  { %v1524_v40 = vadd.f32 %v1523_v39, %v1522_v38 }
 0x163   :  { %v1626_v41 = vpop.f32.mrb[0].mxu0 }
 0x164   :  { %v438_v42 = vpop.f32.mrb[1].mxu0  ;;  %v738_v43 = vpack.c.bf16 %v1524_v40, %v1521_v37 }
 0x165   :  { %v1627_v44 = vpop.f32.mrb[2].mxu0 }
 0x166   :  { %v727_v45 = vpack.c.bf16 %v1627_v44, %v1626_v41  ;;  %v441_v46 = vpop.f32.mrb[3].mxu0  ;;  %v1525_v47 = vpop.f32.mrb[4].mxu1  ;;  %1644 = vmatprep.mubr.msk.bf16.mxu0 %vm762_vm8, %v738_v43 }
 0x167   :  { %v726_v48 = vpack.c.bf16 %v441_v46, %v438_v42  ;;  %v1526_v49 = vpop.f32.mrb[5].mxu1 }
 0x168   :  { %v1527_v50 = vadd.f32 %v1526_v49, %v1525_v47  ;;  %v1528_v51 = vpop.f32.mrb[6].mxu1 }
 0x169   :  { %v1529_v52 = vpop.f32.mrb[7].mxu1 }
 0x16a   :  { %v1530_v53 = vadd.f32 %v1529_v52, %v1528_v51 }
 0x16c   :  { %v739_v54 = vpack.c.bf16 %v1530_v53, %v1527_v50 }
 0x16e   :  { %v1531_v56 = vpop.f32.mrb[8].mxu1  ;;  %1645 = vmatmul.mubr.msk.bf16.vlgmr.msra.gmra.mrb[16].mxu0 %vm762_vm8, %v739_v54 }
 0x16f   :  { %1661 = vmatpush3.bf16.msra.mxu0 %v1776_v33  ;;  %v1532_v57 = vpop.f32.mrb[9].mxu1  ;;  %1664 = vmatprep.mubr.msk.bf16.mxu0 %vm762_vm8, %v726_v48 }
 0x170   :  { %v1533_v58 = vadd.f32 %v1532_v57, %v1531_v56  ;;  %v1534_v59 = vpop.f32.mrb[10].mxu1  ;;  %1662 = vmatprep.subr.bf16.mxu0 %v1777_v55  ;;  %v2138_v56 = vld [vmem:[%s2200_s6] ss:$0 sm:$0xff] }
 0x171   :  { %v1535_v61 = vpop.f32.mrb[11].mxu1 }
 0x172   :  { %v1536_v62 = vadd.f32 %v1535_v61, %v1534_v59 }
 0x173   :  { %v1630_v63 = vpop.f32.mrb[4].mxu0  ;;  %1663 = vmatpush3.bf16.msra.mxu0 %v1777_v55  ;;  %v1781_v55 = vld [vmem:[%s2199_s7 + $0x18] sm:$0xff]  }
 0x174   :  { %v454_v0 = vpop.f32.mrb[5].mxu0  ;;  %v740_v1 = vpack.c.bf16 %v1536_v62, %v1533_v58 }
 0x175   :  { %v1631_v2 = vpop.f32.mrb[6].mxu0 }
 0x176   :  { %v729_v3 = vpack.c.bf16 %v1631_v2, %v1630_v63  ;;  %v457_v4 = vpop.f32.mrb[7].mxu0  ;;  %v1537_v5 = vpop.f32.mrb[12].mxu1  ;;  %1648 = vmatprep.mubr.msk.bf16.mxu1 %vm762_vm8, %v740_v1 }
 0x177   :  { %v728_v6 = vpack.c.bf16 %v457_v4, %v454_v0  ;;  %v1538_v7 = vpop.f32.mrb[13].mxu1 }
 0x178   :  { %v1539_v8 = vadd.f32 %v1538_v7, %v1537_v5  ;;  %v1540_v9 = vpop.f32.mrb[14].mxu1 }
 0x179   :  { %v1541_v10 = vpop.f32.mrb[15].mxu1 }
 0x17a   :  { %v1542_v11 = vadd.f32 %v1541_v10, %v1540_v9  ;;  %1665 = vmatmul.mubr.msk.bf16.vlgmr.msra.gmra.mrb[16].mxu0 %vm762_vm8, %v727_v45 }
 0x17b   :  { %1668 = vmatprep.mubr.msk.bf16.mxu0 %vm762_vm8, %v728_v6 }
 0x17c   :  { %v741_v12 = vpack.c.bf16 %v1542_v11, %v1539_v8 }
 0x17e   :  { %v1543_v14 = vpop.f32.mrb[16].mxu1  ;;  %1649 = vmatmul.mubr.msk.bf16.vlgmr.msra.gmra.mrb[32].mxu1 %vm762_vm8, %v741_v12 }
 0x17f   :  { %v1544_v15 = vpop.f32.mrb[17].mxu1  ;;  %1681 = vmatpush3.bf16.msra.mxu1 %v1778_v34 }
 0x180   :  { %v1545_v16 = vadd.f32 %v1544_v15, %v1543_v14  ;;  %v1546_v17 = vpop.f32.mrb[18].mxu1  ;;  %1682 = vmatprep.subr.bf16.mxu1 %v1779_v13 }
 0x181   :  { %v1547_v19 = vpop.f32.mrb[19].mxu1 }
 0x182   :  { %v1548_v20 = vadd.f32 %v1547_v19, %v1546_v17  ;;  %1669 = vmatmul.mubr.msk.bf16.gmra.mrb[20].mxu0 %vm762_vm8, %v729_v3 }
 0x183   :  { %v1634_v21 = vpop.f32.mrb[8].mxu0  ;;  %1683 = vmatpush3.bf16.msra.mxu1 %v1779_v13 }
 0x184   :  { %v470_v22 = vpop.f32.mrb[9].mxu0  ;;  %v742_v23 = vpack.c.bf16 %v1548_v20, %v1545_v16  ;;  %1684 = vmatprep.subr.bf16.mxu1 %v1780_v18 }
 0x185   :  { %v1635_v24 = vpop.f32.mrb[10].mxu0 }
 0x186   :  { %v731_v25 = vpack.c.bf16 %v1635_v24, %v1634_v21  ;;  %v473_v26 = vpop.f32.mrb[11].mxu0  ;;  %v1549_v27 = vpop.f32.mrb[20].mxu1  ;;  %1652 = vmatprep.mubr.msk.bf16.mxu1 %vm762_vm8, %v742_v23 }
 0x187   :  { %v730_v28 = vpack.c.bf16 %v473_v26, %v470_v22  ;;  %v1550_v29 = vpop.f32.mrb[21].mxu1  ;;  %1685 = vmatpush3.bf16.msra.mxu1 %v1780_v18 }
 0x188   :  { %v1551_v30 = vadd.f32 %v1550_v29, %v1549_v27  ;;  %v1552_v31 = vpop.f32.mrb[22].mxu1  ;;  %1686 = vmatprep.subr.bf16.mxu1 %v1781_v55 }
 0x189   :  { %1672 = vmatprep.mubr.msk.bf16.mxu0 %vm762_vm8, %v730_v28  ;;  %v1553_v32 = vpop.f32.mrb[23].mxu1 }
 0x18a   :  { %v1554_v33 = vadd.f32 %v1553_v32, %v1552_v31  ;;  %1673 = vmatmul.mubr.msk.bf16.gmra.mrb[24].mxu0 %vm762_vm8, %v731_v25 }
 0x18b   :  { %1687 = vmatpush3.bf16.msra.mxu1 %v1781_v55 }
 0x18c   :  { %v743_v34 = vpack.c.bf16 %v1554_v33, %v1551_v30 }
 0x18e   :  { %v1555_v35 = vpop.f32.mrb[24].mxu1  ;;  %1653 = vmatmul.mubr.msk.bf16.gmra.mrb[36].mxu1 %vm762_vm8, %v743_v34 }
 0x18f   :  { %v1556_v36 = vpop.f32.mrb[25].mxu1 }
 0x190   :  { %v1557_v37 = vadd.f32 %v1556_v36, %v1555_v35  ;;  %v1558_v38 = vpop.f32.mrb[26].mxu1 }
 0x191   :  { %v1559_v39 = vpop.f32.mrb[27].mxu1 }
 0x192   :  { %v1560_v40 = vadd.f32 %v1559_v39, %v1558_v38 }
 0x193   :  { %v1638_v41 = vpop.f32.mrb[12].mxu0 }
 0x194   :  { %v486_v42 = vpop.f32.mrb[13].mxu0  ;;  %v744_v43 = vpack.c.bf16 %v1560_v40, %v1557_v37 }
 0x195   :  { %v1639_v44 = vpop.f32.mrb[14].mxu0 }
 0x196   :  { %v733_v45 = vpack.c.bf16 %v1639_v44, %v1638_v41  ;;  %v489_v46 = vpop.f32.mrb[15].mxu0  ;;  %v1561_v47 = vpop.f32.mrb[28].mxu1  ;;  %1656 = vmatprep.mubr.msk.bf16.mxu1 %vm762_vm8, %v744_v43 }
 0x197   :  { %v732_v48 = vpack.c.bf16 %v489_v46, %v486_v42  ;;  %v1562_v49 = vpop.f32.mrb[29].mxu1 }
 0x198   :  { %v1563_v50 = vadd.f32 %v1562_v49, %v1561_v47  ;;  %v1564_v51 = vpop.f32.mrb[30].mxu1 }
 0x199   :  { %1676 = vmatprep.mubr.msk.bf16.mxu0 %vm762_vm8, %v732_v48  ;;  %v1565_v52 = vpop.f32.mrb[31].mxu1 }
 0x19a   :  { %1677 = vmatmul.mubr.msk.bf16.gmra.mrb[28].mxu0 %vm762_vm8, %v733_v45  ;;  %v1566_v53 = vadd.f32 %v1565_v52, %v1564_v51 }
 0x19c   :  { %v745_v54 = vpack.c.bf16 %v1566_v53, %v1563_v50 }
 0x19e   :  { %1657 = vmatmul.mubr.msk.bf16.gmra.mrb[40].mxu1 %vm762_vm8, %v745_v54 }
 0x24d   :  { %v1666_v57 = vpop.f32.mrb[16].mxu0 }
 0x24e   :  { %v1026_v58 = vadd.f32 %v1666_v57, %v2138_v56  ;;  %v954_v59 = vpop.f32.mrb[17].mxu0 }
 0x24f   :  { %v1024_v61 = vadd.f32 %v2138_v56, %v954_v59  ;;  %v1667_v62 = vpop.f32.mrb[18].mxu0 }
 0x250   :  { %v1027_v63 = vadd.f32 %v1667_v62, %v2138_v56  ;;  %v957_v0 = vpop.f32.mrb[19].mxu0  ;;  %v1042_v3 = vmax.f32 %v1026_v58, 0.0 }
 0x251   :  { %v1025_v1 = vadd.f32 %v2138_v56, %v957_v0  ;;  %v1650_v2 = vpop.f32.mrb[32].mxu1  ;;  %v1040_v6 = vmax.f32 %v1024_v61, 0.0 }
 0x252   :  { %v1043_v4 = vmax.f32 %v1027_v63, 0.0  ;;  %v837_v5 = vpop.f32.mrb[33].mxu1 }
 0x253   :  { %v1041_v7 = vmax.f32 %v1025_v1, 0.0  ;;  %v1651_v8 = vpop.f32.mrb[34].mxu1 }
 0x254   :  { %v1057_v9 = vpack.c.bf16 %v1043_v4, %v1042_v3  ;;  %v840_v10 = vpop.f32.mrb[35].mxu1 }
 0x255   :  { %v1056_v11 = vpack.c.bf16 %v1041_v7, %v1040_v6  ;;  %v1670_v12 = vpop.f32.mrb[20].mxu0 }
 0x256   :  { %v979_v13 = vadd.f32 %v1670_v12, %v1650_v2  ;;  %v970_v14 = vpop.f32.mrb[21].mxu0  ;;  %v1784_v12 = vmov 0.0  }
 0x257   :  { %v971_v15 = vadd.f32 %v970_v14, %v837_v5  ;;  %v1671_v16 = vpop.f32.mrb[22].mxu0  ;;  %1688 = vmatprep.mubr.msk.bf16.mxu1 %vm1103_vm9, %v1056_v11  ;;  %1704 = vmatprep.subr.bf16.mxu0 %v1784_v12 }
 0x258   :  { %v1030_v17 = vadd.f32 %v2138_v56, %v979_v13  ;;  %v982_v18 = vadd.f32 %v1671_v16, %v1651_v8  ;;  %v973_v19 = vpop.f32.mrb[23].mxu0  ;;  %1689 = vmatmul.mubr.msk.bf16.vlgmr.msra.gmra.mrb[44].mxu1 %vm1103_vm9, %v1057_v9  ;;  %1720 = vmatprep.mubr.msk.bf16.mxu0 %vm1785_vm10, %v1784_v12 }
 0x259   :  { %v1028_v20 = vadd.f32 %v2138_v56, %v971_v15  ;;  %v974_v21 = vadd.f32 %v973_v19, %v840_v10 }
 0x25a   :  { %v1031_v22 = vadd.f32 %v2138_v56, %v982_v18  ;;  %v1046_v24 = vmax.f32 %v1030_v17, 0.0 }
 0x25b   :  { %v1029_v23 = vadd.f32 %v2138_v56, %v974_v21  ;;  %v1044_v26 = vmax.f32 %v1028_v20, 0.0 }
 0x25c   :  { %v1047_v25 = vmax.f32 %v1031_v22, 0.0 }
 0x25d   :  { %v1045_v27 = vmax.f32 %v1029_v23, 0.0  ;;  %v1674_v28 = vpop.f32.mrb[24].mxu0 }
 0x25e   :  { %v1059_v29 = vpack.c.bf16 %v1047_v25, %v1046_v24  ;;  %v986_v30 = vpop.f32.mrb[25].mxu0 }
 0x25f   :  { %v1058_v31 = vpack.c.bf16 %v1045_v27, %v1044_v26  ;;  %v1675_v32 = vpop.f32.mrb[26].mxu0 }
 0x260   :  { %v989_v33 = vpop.f32.mrb[27].mxu0 }
 0x261   :  { %v1654_v34 = vpop.f32.mrb[36].mxu1  ;;  %1692 = vmatprep.mubr.msk.bf16.mxu1 %vm1103_vm9, %v1058_v31 }
 0x262   :  { %v995_v35 = vadd.f32 %v1674_v28, %v1654_v34  ;;  %v853_v36 = vpop.f32.mrb[37].mxu1  ;;  %1693 = vmatmul.mubr.msk.bf16.gmra.mrb[48].mxu1 %vm1103_vm9, %v1059_v29 }
 0x263   :  { %v987_v37 = vadd.f32 %v986_v30, %v853_v36  ;;  %v1655_v38 = vpop.f32.mrb[38].mxu1 }
 0x264   :  { %v1034_v39 = vadd.f32 %v2138_v56, %v995_v35  ;;  %v998_v40 = vadd.f32 %v1675_v32, %v1655_v38  ;;  %v856_v41 = vpop.f32.mrb[39].mxu1 }
 0x265   :  { %v1032_v42 = vadd.f32 %v2138_v56, %v987_v37  ;;  %v990_v43 = vadd.f32 %v989_v33, %v856_v41 }
 0x266   :  { %v1035_v44 = vadd.f32 %v2138_v56, %v998_v40  ;;  %v1050_v46 = vmax.f32 %v1034_v39, 0.0 }
 0x267   :  { %v1033_v45 = vadd.f32 %v2138_v56, %v990_v43  ;;  %v1048_v48 = vmax.f32 %v1032_v42, 0.0 }
 0x268   :  { %v1051_v47 = vmax.f32 %v1035_v44, 0.0 }
 0x269   :  { %v1049_v49 = vmax.f32 %v1033_v45, 0.0 }
 0x26a   :  { %v1061_v50 = vpack.c.bf16 %v1051_v47, %v1050_v46 }
 0x26b   :  { %v1060_v51 = vpack.c.bf16 %v1049_v49, %v1048_v48 }
 0x26d   :  { %v1678_v52 = vpop.f32.mrb[28].mxu0  ;;  %1696 = vmatprep.mubr.msk.bf16.mxu1 %vm1103_vm9, %v1060_v51 }
 0x26e   :  { %v1002_v53 = vpop.f32.mrb[29].mxu0  ;;  %1697 = vmatmul.mubr.msk.bf16.gmra.mrb[52].mxu1 %vm1103_vm9, %v1061_v50 }
 0x26f   :  { %v1679_v54 = vpop.f32.mrb[30].mxu0 }
 0x270   :  { %v1005_v55 = vpop.f32.mrb[31].mxu0 }
 0x271   :  { %v1658_v57 = vpop.f32.mrb[40].mxu1 }
 0x272   :  { %v1011_v58 = vadd.f32 %v1678_v52, %v1658_v57  ;;  %v869_v59 = vpop.f32.mrb[41].mxu1 }
 0x273   :  { %v1003_v61 = vadd.f32 %v1002_v53, %v869_v59  ;;  %v1659_v62 = vpop.f32.mrb[42].mxu1 }
 0x274   :  { %v1038_v63 = vadd.f32 %v2138_v56, %v1011_v58  ;;  %v1014_v0 = vadd.f32 %v1679_v54, %v1659_v62  ;;  %v872_v1 = vpop.f32.mrb[43].mxu1 }
 0x275   :  { %v1036_v2 = vadd.f32 %v2138_v56, %v1003_v61  ;;  %v1006_v3 = vadd.f32 %v1005_v55, %v872_v1 }
 0x276   :  { %v1039_v4 = vadd.f32 %v2138_v56, %v1014_v0  ;;  %v1054_v6 = vmax.f32 %v1038_v63, 0.0 }
 0x277   :  { %v1037_v5 = vadd.f32 %v2138_v56, %v1006_v3  ;;  %v1052_v8 = vmax.f32 %v1036_v2, 0.0  ;;  %v1473_v56 = vld [vmem:[%s2201_s8] ss:$0 sm:$0xff] }
 0x278   :  { %v1055_v7 = vmax.f32 %v1039_v4, 0.0 }
 0x279   :  { %v1053_v9 = vmax.f32 %v1037_v5, 0.0 }
 0x27a   :  { %v1063_v10 = vpack.c.bf16 %v1055_v7, %v1054_v6 }
 0x27b   :  { %v1062_v11 = vpack.c.bf16 %v1053_v9, %v1052_v8 }
 0x27d   :  { %1700 = vmatprep.mubr.msk.bf16.mxu1 %vm1103_vm9, %v1062_v11 }
 0x27e   :  { %1701 = vmatmul.mubr.msk.bf16.gmra.mrb[56].mxu1 %vm1103_vm9, %v1063_v10 }
 0x32b   :  { %v1690_v13 = vpop.f32.mrb[44].mxu1 }
 0x32c   :  { %v1171_v14 = vadd.f32 %v1690_v13, %v1473_v56  ;;  %v1162_v15 = vpop.f32.mrb[45].mxu1 }
 0x32d   :  { %v1163_v16 = vadd.f32 %v1473_v56, %v1162_v15  ;;  %v1691_v17 = vpop.f32.mrb[46].mxu1  ;;  %v1241_v15 = vld [vmem:[%s2202_s9] sm:$0x1] }
 0x32e   :  { %v1174_v18 = vadd.f32 %v1691_v17, %v1473_v56  ;;  %v1165_v19 = vpop.f32.mrb[47].mxu1  ;;  %v1227_v21 = vmax.f32 %v1171_v14, 0.0 }
 0x32f   :  { %v1166_v20 = vadd.f32 %v1473_v56, %v1165_v19  ;;  %v1225_v23 = vmax.f32 %v1163_v16, 0.0  ;;  %v1257_v16 = vshrl.u32 %v73_v60, 7 }
 0x330   :  { %v1228_v22 = vmax.f32 %v1174_v18, 0.0  ;;  %v1254_v18 = vpop.permute.xlu0 %1253 }
 0x331   :  { %v1226_v24 = vmax.f32 %v1166_v20, 0.0  ;;  %v1258_v17 = vsub.s32 0, %v1257_v16 }
 0x332   :  { %v1243_v25 = vpack.c.bf16 %v1228_v22, %v1227_v21 }
 0x333   :  { %v1242_v26 = vpack.c.bf16 %v1226_v24, %v1225_v23  ;;  %v1259_v19 = vrot.slane %v1254_v18, %v1258_v17 }
 0x334   :  { %v1267_v42 = vsel %vm762_vm8, %v1243_v25, 0 }
 0x335   :  { %v1694_v27 = vpop.f32.mrb[48].mxu1  ;;  %v1264_v28 = vsel %vm762_vm8, %v1242_v26, 0 }
 0x336   :  { %v1187_v29 = vadd.f32 %v1694_v27, %v1473_v56  ;;  %v1178_v30 = vpop.f32.mrb[49].mxu1  ;;  %1705 = vmatpush3.bf16.xpose.msra.mxu0 %v1264_v28 }
 0x337   :  { %v1179_v31 = vadd.f32 %v1473_v56, %v1178_v30  ;;  %v1695_v32 = vpop.f32.mrb[50].mxu1  ;;  %1706 = vmatprep.subr.bf16.mxu0 %v1784_v12 }
 0x338   :  { %v1190_v33 = vadd.f32 %v1695_v32, %v1473_v56  ;;  %v1181_v34 = vpop.f32.mrb[51].mxu1  ;;  %v1231_v36 = vmax.f32 %v1187_v29, 0.0 }
 0x339   :  { %v1182_v35 = vadd.f32 %v1473_v56, %v1181_v34  ;;  %v1229_v38 = vmax.f32 %v1179_v31, 0.0 }
 0x33a   :  { %v1232_v37 = vmax.f32 %v1190_v33, 0.0 }
 0x33b   :  { %v1230_v39 = vmax.f32 %v1182_v35, 0.0 }
 0x33c   :  { %v1245_v40 = vpack.c.bf16 %v1232_v37, %v1231_v36 }
 0x33d   :  { %v1244_v41 = vpack.c.bf16 %v1230_v39, %v1229_v38 }
 0x33e   :  { %1707 = vmatpush3.bf16.xpose.msra.mxu0 %v1267_v42  ;;  %v1273_v59 = vsel %vm762_vm8, %v1245_v40, 0 }
 0x33f   :  { %1708 = vmatprep.subr.bf16.mxu0 %v1784_v12  ;;  %v1270_v51 = vsel %vm762_vm8, %v1244_v41, 0 }
 0x341   :  { %v1698_v43 = vpop.f32.mrb[52].mxu1 }
 0x342   :  { %v1203_v44 = vadd.f32 %v1698_v43, %v1473_v56  ;;  %v1194_v45 = vpop.f32.mrb[53].mxu1 }
 0x343   :  { %v1195_v46 = vadd.f32 %v1473_v56, %v1194_v45  ;;  %v1699_v47 = vpop.f32.mrb[54].mxu1 }
 0x344   :  { %v1206_v48 = vadd.f32 %v1699_v47, %v1473_v56  ;;  %v1197_v49 = vpop.f32.mrb[55].mxu1  ;;  %v1235_v52 = vmax.f32 %v1203_v44, 0.0 }
 0x345   :  { %v1198_v50 = vadd.f32 %v1473_v56, %v1197_v49  ;;  %v1233_v54 = vmax.f32 %v1195_v46, 0.0 }
 0x346   :  { %v1236_v53 = vmax.f32 %v1206_v48, 0.0  ;;  %1709 = vmatpush3.bf16.xpose.msra.mxu0 %v1270_v51 }
 0x347   :  { %v1234_v55 = vmax.f32 %v1198_v50, 0.0  ;;  %1710 = vmatprep.subr.bf16.mxu0 %v1784_v12 }
 0x348   :  { %v1247_v57 = vpack.c.bf16 %v1236_v53, %v1235_v52 }
 0x349   :  { %v1246_v58 = vpack.c.bf16 %v1234_v55, %v1233_v54 }
 0x34a   :  { %v1279_v13 = vsel %vm762_vm8, %v1247_v57, 0 }
 0x34b   :  { %v1276_v5 = vsel %vm762_vm8, %v1246_v58, 0 }
 0x34e   :  { %1711 = vmatpush3.bf16.xpose.msra.mxu0 %v1273_v59 }
 0x34f   :  { %1712 = vmatprep.subr.bf16.mxu0 %v1784_v12 }
 0x351   :  { %v1702_v61 = vpop.f32.mrb[56].mxu1 }
 0x352   :  { %v1219_v62 = vadd.f32 %v1702_v61, %v1473_v56  ;;  %v1210_v63 = vpop.f32.mrb[57].mxu1 }
 0x353   :  { %v1211_v0 = vadd.f32 %v1473_v56, %v1210_v63  ;;  %v1703_v1 = vpop.f32.mrb[58].mxu1 }
 0x354   :  { %v1222_v2 = vadd.f32 %v1703_v1, %v1473_v56  ;;  %v1213_v3 = vpop.f32.mrb[59].mxu1  ;;  %v1239_v6 = vmax.f32 %v1219_v62, 0.0 }
 0x355   :  { %v1214_v4 = vadd.f32 %v1473_v56, %v1213_v3  ;;  %v1237_v8 = vmax.f32 %v1211_v0, 0.0 }
 0x356   :  { %v1240_v7 = vmax.f32 %v1222_v2, 0.0  ;;  %1713 = vmatpush3.bf16.xpose.msra.mxu0 %v1276_v5 }
 0x357   :  { %v1238_v9 = vmax.f32 %v1214_v4, 0.0  ;;  %1714 = vmatprep.subr.bf16.mxu0 %v1784_v12 }
 0x358   :  { %v1249_v10 = vpack.c.bf16 %v1240_v7, %v1239_v6 }
 0x359   :  { %v1248_v11 = vpack.c.bf16 %v1238_v9, %v1237_v8 }
 0x35a   :  { %v1285_v56 = vsel %vm762_vm8, %v1249_v10, 0 }
 0x35b   :  { %v1282_v14 = vsel %vm762_vm8, %v1248_v11, 0 }
 0x35e   :  { %1715 = vmatpush3.bf16.xpose.msra.mxu0 %v1279_v13 }
 0x35f   :  { %1716 = vmatprep.subr.bf16.mxu0 %v1784_v12 }
 0x366   :  { %1717 = vmatpush3.bf16.xpose.msra.mxu0 %v1282_v14 }
 0x367   :  { %1718 = vmatprep.subr.bf16.mxu0 %v1784_v12 }
 0x36e   :  { %1719 = vmatpush3.bf16.xpose.msra.mxu0 %v1285_v56 }
 0x375   :  { %1721 = vmatmul.mubr.msk.bf16.vlgmr.msra.gmra.mrb[32].mxu0 %vm762_vm8, %v1241_v15 }
 0x448   :  { %v1321_v20 = vpop.f32.mrb[32].mxu0 }
 0x449   :  { %v1322_v21 = vadd.f32 %v1321_v20, %v1259_v19  ;;  %v1722_v22 = vpop.f32.mrb[33].mxu0 }
 0x44a   :  { %v1324_v23 = vpop.f32.mrb[34].mxu0 }
 0x44b   :  { %1327 = vst [vmem:[%s2203_s11] sm:$0x1] %v1322_v21  ;;  %v1723_v12 = vpop.f32.mrb[35].mxu0 }

</bundles_post_ra>
